<compile_context>
chip_gen: v5e
topology: v5e:2x2
jax: 0.10.0
libtpu: 0.0.40
codegen_flags: <defaults>
</compile_context>

<pallas_src>
import math

import jax
import jax.numpy as jnp
from jax.experimental import pallas as pl
from jax.experimental.pallas import tpu as pltpu


# ---------------- model dims (small decoder block) ----------------
B = 2            # batch
S = 8            # sequence length (power of two -> cheap block-id via shift)
D = 32           # hidden size
H = 4            # attention heads
HD = D // H      # head dim
DFF = 4 * D      # MLP hidden (= 128, lane-dense)
T = B * S        # flattened rows processed in one kernel step
HT = H * T       # head-folded attention rows
LANES = 128

# packed bf16 weight-slab row offsets (all blocks lane-padded to 128 columns)
OFF_WQKV = 0                 # rows [0, D)        cols [0, 3D): fused [Wq | Wk | Wv]
OFF_WO = D                   # rows [D, 2D)       cols [0, D)
OFF_W1 = 2 * D               # rows [2D, 3D)      cols [0, DFF)
OFF_W2 = 3 * D               # rows [3D, 3D+DFF)  cols [0, D)
W_ROWS = 3 * D + DFF         # 224

# packed f32 small-param rows
ROW_BQKV = 0                 # cols [0, 3D)
ROW_B1 = 1                   # cols [0, DFF)
ROW_G1, ROW_BE1, ROW_G2, ROW_BE2, ROW_BO, ROW_B2 = 2, 3, 4, 5, 6, 7
PRM_ROWS = 8


def _layernorm(x, gamma, beta, eps=1e-5):
    mean = jnp.mean(x, axis=-1, keepdims=True)
    var = jnp.mean((x - mean) ** 2, axis=-1, keepdims=True)
    return (x - mean) * jax.lax.rsqrt(var + eps) * gamma + beta


def f_dec_kernel(x_ref, w_ref, prm_ref, o_ref):
    f32 = jnp.float32
    bf16 = jnp.bfloat16

    x = x_ref[...]                                        # (T, D) f32, batches flattened

    # ---- small f32 params: static slices of one packed buffer ----
    bqkv = prm_ref[ROW_BQKV:ROW_BQKV + 1, :]              # (1, 128), cols >= 3D are zero
    b1 = prm_ref[ROW_B1:ROW_B1 + 1, 0:DFF]                # (1, DFF)
    g1 = prm_ref[ROW_G1:ROW_G1 + 1, 0:D]
    be1 = prm_ref[ROW_BE1:ROW_BE1 + 1, 0:D]
    g2 = prm_ref[ROW_G2:ROW_G2 + 1, 0:D]
    be2 = prm_ref[ROW_BE2:ROW_BE2 + 1, 0:D]
    bo = prm_ref[ROW_BO:ROW_BO + 1, 0:D]
    b2 = prm_ref[ROW_B2:ROW_B2 + 1, 0:D]

    # ---- LN1 + fused QKV projection: ONE (T,D)x(D,128) bf16 matmul ----
    h1 = _layernorm(x, g1, be1)                           # (T, D) f32
    wqkv = w_ref[OFF_WQKV:OFF_WQKV + D, :]                # (D, 128) bf16, cols >= 3D zero
    qkv = jnp.dot(h1.astype(bf16), wqkv,
                  preferred_element_type=f32) + bqkv      # (T, 128) f32
    qkv16 = qkv.astype(bf16)

    # ---- fold heads into the sublane dim: (T, head-major cols) -> (H*T, HD) rows ----
    def fold(base):
        return jnp.concatenate(
            [qkv16[:, base + h * HD: base + (h + 1) * HD] for h in range(H)], axis=0)

    qf = fold(0)                                          # (HT, HD) bf16
    kf = fold(D)
    vf = fold(2 * D)

    # block-diagonal mask over the 64 folded rows: same head AND same batch AND causal.
    # row = h*T + b*S + s  =>  (row >> log2(S)) == (h*B + b)
    shift = int(math.log2(S))
    r = jax.lax.broadcasted_iota(jnp.int32, (HT, HT), 0)
    c = jax.lax.broadcasted_iota(jnp.int32, (HT, HT), 1)
    mask = ((r >> shift) == (c >> shift)) & (r >= c)

    # ---- attention: 2 matmuls total ----
    s = jnp.einsum('te,se->ts', qf, kf,
                   preferred_element_type=f32) * (1.0 / math.sqrt(HD))    # (HT, HT)
    s = jnp.where(mask, s, -1e30)
    s = s - jnp.max(s, axis=-1, keepdims=True)
    p = jnp.exp(s)
    p = p * pl.reciprocal(jnp.sum(p, axis=-1, keepdims=True), approx=True)
    ctxf = jnp.dot(p.astype(bf16), vf, preferred_element_type=f32)        # (HT, HD)

    # unfold heads back into lanes: (H*T, HD) -> (T, D)
    ctx = jnp.concatenate([ctxf[h * T:(h + 1) * T, :] for h in range(H)], axis=1)

    # ---- output projection: ONE (T,D)x(D,D) matmul ----
    wo = w_ref[OFF_WO:OFF_WO + D, 0:D]                    # (D, D) bf16
    attn = jnp.dot(ctx.astype(bf16), wo, preferred_element_type=f32) + bo
    a = x + attn                                          # internal residual 1

    # ---- LN2 + MLP (2 matmuls) ----
    h2 = _layernorm(a, g2, be2)
    w1 = w_ref[OFF_W1:OFF_W1 + D, 0:DFF]                  # (D, DFF) bf16
    w2 = w_ref[OFF_W2:OFF_W2 + DFF, 0:D]                  # (DFF, D) bf16
    ff = jnp.dot(h2.astype(bf16), w1, preferred_element_type=f32) + b1    # (T, DFF)
    ff = jax.nn.gelu(ff)
    ff = jnp.dot(ff.astype(bf16), w2, preferred_element_type=f32) + b2    # (T, D)

    o_ref[...] = (a + ff).astype(o_ref.dtype)             # internal residual 2


def _full_spec(shape):
    rank = len(shape)
    return pl.BlockSpec(shape, lambda i, _r=rank: (0,) * _r)


def continuous_residual_layer(x, params):
    """x: (B, S, D) float32 -> {'x': (B, S, D) float32}"""
    (wq, wk, wv, wo, bq, bk, bv, bo, g1, be1, g2, be2, w1, b1, w2, b2) = params
    bsz, s, d = x.shape
    x_flat = x.reshape(bsz * s, d)

    # ---- one lane-dense bf16 weight slab (single DMA) ----
    w_slab = jnp.zeros((W_ROWS, LANES), jnp.float32)
    w_slab = w_slab.at[OFF_WQKV:OFF_WQKV + D, 0:3 * D].set(
        jnp.concatenate([wq, wk, wv], axis=1))
    w_slab = w_slab.at[OFF_WO:OFF_WO + D, 0:D].set(wo)
    w_slab = w_slab.at[OFF_W1:OFF_W1 + D, 0:DFF].set(w1)
    w_slab = w_slab.at[OFF_W2:OFF_W2 + DFF, 0:D].set(w2)
    w_slab = w_slab.astype(jnp.bfloat16)

    # ---- one f32 buffer for all small vectors (single DMA) ----
    prm = jnp.zeros((PRM_ROWS, LANES), jnp.float32)
    prm = prm.at[ROW_BQKV, 0:3 * D].set(jnp.concatenate([bq, bk, bv]))
    prm = prm.at[ROW_B1, 0:DFF].set(b1)
    prm = prm.at[ROW_G1, 0:D].set(g1)
    prm = prm.at[ROW_BE1, 0:D].set(be1)
    prm = prm.at[ROW_G2, 0:D].set(g2)
    prm = prm.at[ROW_BE2, 0:D].set(be2)
    prm = prm.at[ROW_BO, 0:D].set(bo)
    prm = prm.at[ROW_B2, 0:D].set(b2)

    # ---- cost estimate (tiny, latency-bound kernel; helps XLA schedule around it) ----
    flops = (2 * T * D * 3 * D          # fused qkv
             + 2 * HT * HT * HD * 2     # scores + pv
             + 2 * T * D * D            # out proj
             + 2 * T * D * DFF * 2)     # mlp
    transcendentals = HT * HT + T * DFF + 2 * T + HT
    bytes_accessed = 2 * T * D * 4 + W_ROWS * LANES * 2 + PRM_ROWS * LANES * 4

    out_flat = pl.pallas_call(
        f_dec_kernel,
        out_shape=jax.ShapeDtypeStruct((bsz * s, d), x.dtype),
        grid_spec=pltpu.PrefetchScalarGridSpec(
            num_scalar_prefetch=0,
            grid=(1,),                     # single kernel step: all 16 rows at once
            in_specs=[
                _full_spec(x_flat.shape),
                _full_spec(w_slab.shape),
                _full_spec(prm.shape),
            ],
            out_specs=_full_spec((bsz * s, d)),
        ),
        compiler_params=pltpu.CompilerParams(dimension_semantics=("arbitrary",)),
        cost_estimate=pl.CostEstimate(flops=flops, transcendentals=transcendentals,
                                      bytes_accessed=bytes_accessed),
    )(x_flat, w_slab, prm)

    return {"x": out_flat.reshape(bsz, s, d)}


# ---------------- pure-JAX f32 reference for verification ----------------
def reference_forward(x, params):
    (wq, wk, wv, wo, bq, bk, bv, bo, g1, be1, g2, be2, w1, b1, w2, b2) = params

    def one(xb):
        h = _layernorm(xb, g1, be1)
        q = h @ wq + bq
        k = h @ wk + bk
        v = h @ wv + bv
        qh = q.reshape(S, H, HD).transpose(1, 0, 2)
        kh = k.reshape(S, H, HD).transpose(1, 0, 2)
        vh = v.reshape(S, H, HD).transpose(1, 0, 2)
        scores = jnp.einsum("hqd,hkd->hqk", qh, kh) / math.sqrt(HD)
        mask = jnp.tril(jnp.ones((S, S), bool))
        scores = jnp.where(mask[None], scores, -1e30)
        p = jax.nn.softmax(scores, axis=-1)
        ctx = jnp.einsum("hqk,hkd->hqd", p, vh).transpose(1, 0, 2).reshape(S, D)
        a = xb + ctx @ wo + bo
        h2 = _layernorm(a, g2, be2)
        ff = jax.nn.gelu(h2 @ w1 + b1) @ w2 + b2
        return a + ff

    return {"x": jax.vmap(one)(x)}


def init_params(key):
    ks = jax.random.split(key, 16)
    s_w, s_b = 0.02, 0.02
    wq = s_w * jax.random.normal(ks[0], (D, D), jnp.float32)
    wk = s_w * jax.random.normal(ks[1], (D, D), jnp.float32)
    wv = s_w * jax.random.normal(ks[2], (D, D), jnp.float32)
    wo = s_w * jax.random.normal(ks[3], (D, D), jnp.float32)
    w1 = s_w * jax.random.normal(ks[4], (D, DFF), jnp.float32)
    w2 = s_w * jax.random.normal(ks[5], (DFF, D), jnp.float32)
    bq = s_b * jax.random.normal(ks[6], (D,), jnp.float32)
    bk = s_b * jax.random.normal(ks[7], (D,), jnp.float32)
    bv = s_b * jax.random.normal(ks[8], (D,), jnp.float32)
    bo = s_b * jax.random.normal(ks[9], (D,), jnp.float32)
    b1 = s_b * jax.random.normal(ks[10], (DFF,), jnp.float32)
    b2 = s_b * jax.random.normal(ks[11], (D,), jnp.float32)
    g1 = 1.0 + 0.1 * jax.random.normal(ks[12], (D,), jnp.float32)
    be1 = 0.1 * jax.random.normal(ks[13], (D,), jnp.float32)
    g2 = 1.0 + 0.1 * jax.random.normal(ks[14], (D,), jnp.float32)
    be2 = 0.1 * jax.random.normal(ks[15], (D,), jnp.float32)
    return (wq, wk, wv, wo, bq, bk, bv, bo, g1, be1, g2, be2, w1, b1, w2, b2)


if __name__ == "__main__":
    key = jax.random.PRNGKey(0)
    kx, kp = jax.random.split(key)
    x = jax.random.normal(kx, (B, S, D), jnp.float32)
    params = init_params(kp)

    out = continuous_residual_layer(x, params)
    jax.block_until_ready(out["x"])

    ref = reference_forward(x, params)
    assert out["x"].shape == (B, S, D)
    # bf16 MXU operands + approx reciprocal -> slightly looser tolerance vs f32 reference
    assert jnp.allclose(out["x"], ref["x"], atol=2e-2, rtol=2e-2), "mismatch vs reference"

    print("KERNEL_OK")
</pallas_src>

<mosaic_0001>
module attributes {stable_mosaic.version = 11 : i64} {
  func.func @f_dec_kernel(%arg0: i32, %arg1: memref<16x32xf32, #tpu.memory_space<vmem>>, %arg2: memref<224x128xbf16, #tpu.memory_space<vmem>>, %arg3: memref<8x128xf32, #tpu.memory_space<vmem>>, %arg4: memref<16x32xf32, #tpu.memory_space<vmem>>) attributes {dimension_semantics = [#tpu.dimension_semantics<arbitrary>], iteration_bounds = array<i64: 1>, scalar_prefetch = 0 : i64, scratch_operands = 0 : i64, tpu.core_type = #tpu.core_type<tc>, window_params = [{pipeline_mode = #tpu.pipeline_mode<synchronous>, transform_indices = @transform_0, window_bounds = array<i64: 16, 32>}, {pipeline_mode = #tpu.pipeline_mode<synchronous>, transform_indices = @transform_1, window_bounds = array<i64: 224, 128>}, {pipeline_mode = #tpu.pipeline_mode<synchronous>, transform_indices = @transform_2, window_bounds = array<i64: 8, 128>}, {pipeline_mode = #tpu.pipeline_mode<synchronous>, transform_indices = @transform_3, window_bounds = array<i64: 16, 32>}]} {
    %c0 = arith.constant 0 : index
    %c0_0 = arith.constant 0 : index
    %0 = vector.load %arg1[%c0, %c0_0] : memref<16x32xf32, #tpu.memory_space<vmem>>, vector<16x32xf32>
    %c0_1 = arith.constant 0 : index
    %c0_2 = arith.constant 0 : index
    %1 = vector.load %arg3[%c0_1, %c0_2] : memref<8x128xf32, #tpu.memory_space<vmem>>, vector<1x128xf32>
    %c1 = arith.constant 1 : index
    %c0_3 = arith.constant 0 : index
    %2 = vector.load %arg3[%c1, %c0_3] : memref<8x128xf32, #tpu.memory_space<vmem>>, vector<1x128xf32>
    %c2 = arith.constant 2 : index
    %c0_4 = arith.constant 0 : index
    %3 = vector.load %arg3[%c2, %c0_4] : memref<8x128xf32, #tpu.memory_space<vmem>>, vector<1x32xf32>
    %c3 = arith.constant 3 : index
    %c0_5 = arith.constant 0 : index
    %4 = vector.load %arg3[%c3, %c0_5] : memref<8x128xf32, #tpu.memory_space<vmem>>, vector<1x32xf32>
    %c4 = arith.constant 4 : index
    %c0_6 = arith.constant 0 : index
    %5 = vector.load %arg3[%c4, %c0_6] : memref<8x128xf32, #tpu.memory_space<vmem>>, vector<1x32xf32>
    %c5 = arith.constant 5 : index
    %c0_7 = arith.constant 0 : index
    %6 = vector.load %arg3[%c5, %c0_7] : memref<8x128xf32, #tpu.memory_space<vmem>>, vector<1x32xf32>
    %c6 = arith.constant 6 : index
    %c0_8 = arith.constant 0 : index
    %7 = vector.load %arg3[%c6, %c0_8] : memref<8x128xf32, #tpu.memory_space<vmem>>, vector<1x32xf32>
    %c7 = arith.constant 7 : index
    %c0_9 = arith.constant 0 : index
    %8 = vector.load %arg3[%c7, %c0_9] : memref<8x128xf32, #tpu.memory_space<vmem>>, vector<1x32xf32>
    %cst = arith.constant dense<0.000000e+00> : vector<16xf32>
    %9 = vector.multi_reduction <add>, %0, %cst [1] : vector<16x32xf32> to vector<16xf32>
    %10 = vector.shape_cast %9 : vector<16xf32> to vector<16x1xf32>
    %cst_10 = arith.constant 3.200000e+01 : f32
    %11 = vector.broadcast %cst_10 : f32 to vector<16x1xf32>
    %12 = arith.divf %10, %11 : vector<16x1xf32>
    %13 = vector.broadcast %12 : vector<16x1xf32> to vector<16x32xf32>
    %14 = arith.subf %0, %13 : vector<16x32xf32>
    %15 = arith.mulf %14, %14 : vector<16x32xf32>
    %cst_11 = arith.constant dense<0.000000e+00> : vector<16xf32>
    %16 = vector.multi_reduction <add>, %15, %cst_11 [1] : vector<16x32xf32> to vector<16xf32>
    %17 = vector.shape_cast %16 : vector<16xf32> to vector<16x1xf32>
    %cst_12 = arith.constant 3.200000e+01 : f32
    %18 = vector.broadcast %cst_12 : f32 to vector<16x1xf32>
    %19 = arith.divf %17, %18 : vector<16x1xf32>
    %20 = vector.broadcast %12 : vector<16x1xf32> to vector<16x32xf32>
    %21 = arith.subf %0, %20 : vector<16x32xf32>
    %cst_13 = arith.constant 9.99999974E-6 : f32
    %22 = vector.broadcast %cst_13 : f32 to vector<16x1xf32>
    %23 = arith.addf %19, %22 : vector<16x1xf32>
    %24 = math.rsqrt %23 : vector<16x1xf32>
    %25 = vector.broadcast %24 : vector<16x1xf32> to vector<16x32xf32>
    %26 = arith.mulf %21, %25 : vector<16x32xf32>
    %27 = vector.broadcast %3 : vector<1x32xf32> to vector<16x32xf32>
    %28 = arith.mulf %26, %27 : vector<16x32xf32>
    %29 = vector.broadcast %4 : vector<1x32xf32> to vector<16x32xf32>
    %30 = arith.addf %28, %29 : vector<16x32xf32>
    %c0_14 = arith.constant 0 : index
    %c0_15 = arith.constant 0 : index
    %31 = vector.load %arg2[%c0_14, %c0_15] : memref<224x128xbf16, #tpu.memory_space<vmem>>, vector<32x128xbf16>
    %32 = arith.truncf %30 : vector<16x32xf32> to vector<16x32xbf16>
    %cst_16 = arith.constant dense<0.000000e+00> : vector<16x128xf32>
    %33 = tpu.matmul %32, %31, %cst_16 {dimension_numbers = #tpu.dot_dimension_numbers<[1], [0], [0], [1], [0, 0, 1, 1], [], []>} : vector<16x32xbf16>, vector<32x128xbf16>, vector<16x128xf32> -> vector<16x128xf32>
    %34 = vector.broadcast %1 : vector<1x128xf32> to vector<16x128xf32>
    %35 = arith.addf %33, %34 : vector<16x128xf32>
    %36 = arith.truncf %35 : vector<16x128xf32> to vector<16x128xbf16>
    %37 = vector.extract_strided_slice %36 {offsets = [0, 0], sizes = [16, 8], strides = [1, 1]} : vector<16x128xbf16> to vector<16x8xbf16>
    %38 = vector.extract_strided_slice %36 {offsets = [0, 8], sizes = [16, 8], strides = [1, 1]} : vector<16x128xbf16> to vector<16x8xbf16>
    %39 = vector.extract_strided_slice %36 {offsets = [0, 16], sizes = [16, 8], strides = [1, 1]} : vector<16x128xbf16> to vector<16x8xbf16>
    %40 = vector.extract_strided_slice %36 {offsets = [0, 24], sizes = [16, 8], strides = [1, 1]} : vector<16x128xbf16> to vector<16x8xbf16>
    %41 = tpu.concatenate %37, %38, %39, %40 in 0 : vector<16x8xbf16>, vector<16x8xbf16>, vector<16x8xbf16>, vector<16x8xbf16> -> vector<64x8xbf16>
    %42 = vector.extract_strided_slice %36 {offsets = [0, 32], sizes = [16, 8], strides = [1, 1]} : vector<16x128xbf16> to vector<16x8xbf16>
    %43 = vector.extract_strided_slice %36 {offsets = [0, 40], sizes = [16, 8], strides = [1, 1]} : vector<16x128xbf16> to vector<16x8xbf16>
    %44 = vector.extract_strided_slice %36 {offsets = [0, 48], sizes = [16, 8], strides = [1, 1]} : vector<16x128xbf16> to vector<16x8xbf16>
    %45 = vector.extract_strided_slice %36 {offsets = [0, 56], sizes = [16, 8], strides = [1, 1]} : vector<16x128xbf16> to vector<16x8xbf16>
    %46 = tpu.concatenate %42, %43, %44, %45 in 0 : vector<16x8xbf16>, vector<16x8xbf16>, vector<16x8xbf16>, vector<16x8xbf16> -> vector<64x8xbf16>
    %47 = vector.extract_strided_slice %36 {offsets = [0, 64], sizes = [16, 8], strides = [1, 1]} : vector<16x128xbf16> to vector<16x8xbf16>
    %48 = vector.extract_strided_slice %36 {offsets = [0, 72], sizes = [16, 8], strides = [1, 1]} : vector<16x128xbf16> to vector<16x8xbf16>
    %49 = vector.extract_strided_slice %36 {offsets = [0, 80], sizes = [16, 8], strides = [1, 1]} : vector<16x128xbf16> to vector<16x8xbf16>
    %50 = vector.extract_strided_slice %36 {offsets = [0, 88], sizes = [16, 8], strides = [1, 1]} : vector<16x128xbf16> to vector<16x8xbf16>
    %51 = tpu.concatenate %47, %48, %49, %50 in 0 : vector<16x8xbf16>, vector<16x8xbf16>, vector<16x8xbf16>, vector<16x8xbf16> -> vector<64x8xbf16>
    %52 = tpu.iota {dimensions = array<i32: 0>} : vector<64x64xi32>
    %53 = tpu.iota {dimensions = array<i32: 1>} : vector<64x64xi32>
    %c3_i32 = arith.constant 3 : i32
    %54 = vector.broadcast %c3_i32 : i32 to vector<64x64xi32>
    %55 = arith.shrsi %52, %54 : vector<64x64xi32>
    %c3_i32_17 = arith.constant 3 : i32
    %56 = vector.broadcast %c3_i32_17 : i32 to vector<64x64xi32>
    %57 = arith.shrsi %53, %56 : vector<64x64xi32>
    %58 = arith.cmpi eq, %55, %57 : vector<64x64xi32>
    %59 = arith.cmpi sge, %52, %53 : vector<64x64xi32>
    %60 = arith.andi %58, %59 : vector<64x64xi1>
    "tpu.trace_start"() <{level = 10 : i32, message = "te,se->ts"}> : () -> ()
    %cst_18 = arith.constant dense<0.000000e+00> : vector<64x64xf32>
    %61 = tpu.matmul %41, %46, %cst_18 {dimension_numbers = #tpu.dot_dimension_numbers<[1], [1], [0], [0], [0, 0, 1, 0], [], []>} : vector<64x8xbf16>, vector<64x8xbf16>, vector<64x64xf32> -> vector<64x64xf32>
    "tpu.trace_stop"() : () -> ()
    %cst_19 = arith.constant 0.353553385 : f32
    %62 = vector.broadcast %cst_19 : f32 to vector<64x64xf32>
    %63 = arith.mulf %61, %62 : vector<64x64xf32>
    %cst_20 = arith.constant -1.000000e+30 : f32
    %64 = vector.broadcast %cst_20 : f32 to vector<64x64xf32>
    %65 = arith.select %60, %63, %64 : vector<64x64xi1>, vector<64x64xf32>
    %cst_21 = arith.constant dense<0xFF800000> : vector<64xf32>
    %66 = vector.multi_reduction <maximumf>, %65, %cst_21 [1] : vector<64x64xf32> to vector<64xf32>
    %67 = vector.shape_cast %66 : vector<64xf32> to vector<64x1xf32>
    %68 = vector.broadcast %67 : vector<64x1xf32> to vector<64x64xf32>
    %69 = arith.subf %65, %68 : vector<64x64xf32>
    %70 = math.exp %69 : vector<64x64xf32>
    %cst_22 = arith.constant dense<0.000000e+00> : vector<64xf32>
    %71 = vector.multi_reduction <add>, %70, %cst_22 [1] : vector<64x64xf32> to vector<64xf32>
    %72 = vector.shape_cast %71 : vector<64xf32> to vector<64x1xf32>
    %73 = tpu.reciprocal %72 {approx = true} : vector<64x1xf32> -> vector<64x1xf32>
    %74 = vector.broadcast %73 : vector<64x1xf32> to vector<64x64xf32>
    %75 = arith.mulf %70, %74 : vector<64x64xf32>
    %76 = arith.truncf %75 : vector<64x64xf32> to vector<64x64xbf16>
    %cst_23 = arith.constant dense<0.000000e+00> : vector<64x8xf32>
    %77 = tpu.matmul %76, %51, %cst_23 {dimension_numbers = #tpu.dot_dimension_numbers<[1], [0], [0], [1], [0, 0, 1, 1], [], []>} : vector<64x64xbf16>, vector<64x8xbf16>, vector<64x8xf32> -> vector<64x8xf32>
    %78 = vector.extract_strided_slice %77 {offsets = [0, 0], sizes = [16, 8], strides = [1, 1]} : vector<64x8xf32> to vector<16x8xf32>
    %79 = vector.extract_strided_slice %77 {offsets = [16, 0], sizes = [16, 8], strides = [1, 1]} : vector<64x8xf32> to vector<16x8xf32>
    %80 = vector.extract_strided_slice %77 {offsets = [32, 0], sizes = [16, 8], strides = [1, 1]} : vector<64x8xf32> to vector<16x8xf32>
    %81 = vector.extract_strided_slice %77 {offsets = [48, 0], sizes = [16, 8], strides = [1, 1]} : vector<64x8xf32> to vector<16x8xf32>
    %82 = tpu.concatenate %78, %79, %80, %81 in 1 : vector<16x8xf32>, vector<16x8xf32>, vector<16x8xf32>, vector<16x8xf32> -> vector<16x32xf32>
    %c32 = arith.constant 32 : index
    %c0_24 = arith.constant 0 : index
    %83 = vector.load %arg2[%c32, %c0_24] : memref<224x128xbf16, #tpu.memory_space<vmem>>, vector<32x32xbf16>
    %84 = arith.truncf %82 : vector<16x32xf32> to vector<16x32xbf16>
    %cst_25 = arith.constant dense<0.000000e+00> : vector<16x32xf32>
    %85 = tpu.matmul %84, %83, %cst_25 {dimension_numbers = #tpu.dot_dimension_numbers<[1], [0], [0], [1], [0, 0, 1, 1], [], []>} : vector<16x32xbf16>, vector<32x32xbf16>, vector<16x32xf32> -> vector<16x32xf32>
    %86 = vector.broadcast %7 : vector<1x32xf32> to vector<16x32xf32>
    %87 = arith.addf %85, %86 : vector<16x32xf32>
    %88 = arith.addf %0, %87 : vector<16x32xf32>
    %cst_26 = arith.constant dense<0.000000e+00> : vector<16xf32>
    %89 = vector.multi_reduction <add>, %88, %cst_26 [1] : vector<16x32xf32> to vector<16xf32>
    %90 = vector.shape_cast %89 : vector<16xf32> to vector<16x1xf32>
    %cst_27 = arith.constant 3.200000e+01 : f32
    %91 = vector.broadcast %cst_27 : f32 to vector<16x1xf32>
    %92 = arith.divf %90, %91 : vector<16x1xf32>
    %93 = vector.broadcast %92 : vector<16x1xf32> to vector<16x32xf32>
    %94 = arith.subf %88, %93 : vector<16x32xf32>
    %95 = arith.mulf %94, %94 : vector<16x32xf32>
    %cst_28 = arith.constant dense<0.000000e+00> : vector<16xf32>
    %96 = vector.multi_reduction <add>, %95, %cst_28 [1] : vector<16x32xf32> to vector<16xf32>
    %97 = vector.shape_cast %96 : vector<16xf32> to vector<16x1xf32>
    %cst_29 = arith.constant 3.200000e+01 : f32
    %98 = vector.broadcast %cst_29 : f32 to vector<16x1xf32>
    %99 = arith.divf %97, %98 : vector<16x1xf32>
    %100 = vector.broadcast %92 : vector<16x1xf32> to vector<16x32xf32>
    %101 = arith.subf %88, %100 : vector<16x32xf32>
    %cst_30 = arith.constant 9.99999974E-6 : f32
    %102 = vector.broadcast %cst_30 : f32 to vector<16x1xf32>
    %103 = arith.addf %99, %102 : vector<16x1xf32>
    %104 = math.rsqrt %103 : vector<16x1xf32>
    %105 = vector.broadcast %104 : vector<16x1xf32> to vector<16x32xf32>
    %106 = arith.mulf %101, %105 : vector<16x32xf32>
    %107 = vector.broadcast %5 : vector<1x32xf32> to vector<16x32xf32>
    %108 = arith.mulf %106, %107 : vector<16x32xf32>
    %109 = vector.broadcast %6 : vector<1x32xf32> to vector<16x32xf32>
    %110 = arith.addf %108, %109 : vector<16x32xf32>
    %c64 = arith.constant 64 : index
    %c0_31 = arith.constant 0 : index
    %111 = vector.load %arg2[%c64, %c0_31] : memref<224x128xbf16, #tpu.memory_space<vmem>>, vector<32x128xbf16>
    %c96 = arith.constant 96 : index
    %c0_32 = arith.constant 0 : index
    %112 = vector.load %arg2[%c96, %c0_32] : memref<224x128xbf16, #tpu.memory_space<vmem>>, vector<128x32xbf16>
    %113 = arith.truncf %110 : vector<16x32xf32> to vector<16x32xbf16>
    %cst_33 = arith.constant dense<0.000000e+00> : vector<16x128xf32>
    %114 = tpu.matmul %113, %111, %cst_33 {dimension_numbers = #tpu.dot_dimension_numbers<[1], [0], [0], [1], [0, 0, 1, 1], [], []>} : vector<16x32xbf16>, vector<32x128xbf16>, vector<16x128xf32> -> vector<16x128xf32>
    %115 = vector.broadcast %2 : vector<1x128xf32> to vector<16x128xf32>
    %116 = arith.addf %114, %115 : vector<16x128xf32>
    %117 = arith.mulf %116, %116 : vector<16x128xf32>
    %118 = arith.mulf %116, %117 : vector<16x128xf32>
    %cst_34 = arith.constant 4.471500e-02 : f32
    %119 = vector.broadcast %cst_34 : f32 to vector<16x128xf32>
    %120 = arith.mulf %119, %118 : vector<16x128xf32>
    %121 = arith.addf %116, %120 : vector<16x128xf32>
    %cst_35 = arith.constant 0.797884583 : f32
    %122 = vector.broadcast %cst_35 : f32 to vector<16x128xf32>
    %123 = arith.mulf %122, %121 : vector<16x128xf32>
    %124 = math.tanh %123 : vector<16x128xf32>
    %cst_36 = arith.constant 1.000000e+00 : f32
    %125 = vector.broadcast %cst_36 : f32 to vector<16x128xf32>
    %126 = arith.addf %125, %124 : vector<16x128xf32>
    %cst_37 = arith.constant 5.000000e-01 : f32
    %127 = vector.broadcast %cst_37 : f32 to vector<16x128xf32>
    %128 = arith.mulf %127, %126 : vector<16x128xf32>
    %129 = arith.mulf %116, %128 : vector<16x128xf32>
    %130 = arith.truncf %129 : vector<16x128xf32> to vector<16x128xbf16>
    %cst_38 = arith.constant dense<0.000000e+00> : vector<16x32xf32>
    %131 = tpu.matmul %130, %112, %cst_38 {dimension_numbers = #tpu.dot_dimension_numbers<[1], [0], [0], [1], [0, 0, 1, 1], [], []>} : vector<16x128xbf16>, vector<128x32xbf16>, vector<16x32xf32> -> vector<16x32xf32>
    %132 = vector.broadcast %8 : vector<1x32xf32> to vector<16x32xf32>
    %133 = arith.addf %131, %132 : vector<16x32xf32>
    %134 = arith.addf %88, %133 : vector<16x32xf32>
    %c0_39 = arith.constant 0 : index
    %c0_40 = arith.constant 0 : index
    %135 = vector.load %arg4[%c0_39, %c0_40] : memref<16x32xf32, #tpu.memory_space<vmem>>, vector<16x32xf32>
    tpu.vector_store %arg4[%c0_39, %c0_40], %134 {strides = array<i32>} : memref<16x32xf32, #tpu.memory_space<vmem>>, vector<16x32xf32>,
    return
  }
  func.func @transform_0(%arg0: i32) -> (i32, i32) {
    %c0_i32 = arith.constant 0 : i32
    %c0_i32_0 = arith.constant 0 : i32
    %c0_i32_1 = arith.constant 0 : i32
    return %c0_i32, %c0_i32_0 : i32, i32
  }
  func.func @transform_1(%arg0: i32) -> (i32, i32) {
    %c0_i32 = arith.constant 0 : i32
    %c0_i32_0 = arith.constant 0 : i32
    %c0_i32_1 = arith.constant 0 : i32
    return %c0_i32, %c0_i32_0 : i32, i32
  }
  func.func @transform_2(%arg0: i32) -> (i32, i32) {
    %c0_i32 = arith.constant 0 : i32
    %c0_i32_0 = arith.constant 0 : i32
    %c0_i32_1 = arith.constant 0 : i32
    return %c0_i32, %c0_i32_0 : i32, i32
  }
  func.func @transform_3(%arg0: i32) -> (i32, i32) {
    %c0_i32 = arith.constant 0 : i32
    %c0_i32_0 = arith.constant 0 : i32
    %c0_i32_1 = arith.constant 0 : i32
    return %c0_i32, %c0_i32_0 : i32, i32
  }
}

</mosaic_0001>

<bundles_post_ra>
// kernel: tpu_custom_call.1
= control target key start
LH: loop header
LB: loop body
LE: loop exit
PB: predicated region body
PF: predicated region fallthrough
CT: control target
= control target key end

     0   :  { %8 = vsyncpa [#allocation3], 0  ;;  %s1195_s0 = inlined_call_operand.hbm [shape: f32[16,32], index: 0, kind: input, shape index: {}]   ;;  %s1196_s1 = inlined_call_operand.hbm [shape: bf16[224,128], index: 1, kind: input, shape index: {}]   ;;  %s1197_s2 = inlined_call_operand.hbm [shape: f32[8,128], index: 2, kind: input, shape index: {}]   ;;  %s1198_s3 = inlined_call_operand.hbm [shape: f32[16,32], index: 3, kind: output, shape index: {}]  }
   0x1   :  { %9 = vsyncpa [#allocation6], 0  ;;  %s28_s14 = sshll.u32 %s1196_s1, 4  ;;  %s29_s14 = int_to_ptr.hbm [resolvable:$true] %s28_s14 }
   0x2   :  { %10 = vsyncpa [#allocation4], 0  ;;  %s992_s15 = smov [#allocation5]   ;;  %s15_s19 = sshll.u32 %s1195_s0, 4  ;;  %s16_s19 = int_to_ptr.hbm [resolvable:$true] %s15_s19 }
   0x3   :  { %s30_s16 = sshll.u32 %s992_s15, 4  ;;  %s993_s20 = smov 64   ;;  %s31_s16 = int_to_ptr.vmem [resolvable:$true] %s30_s16 }
   0x4   :  { %s994_s21 = smov 4   ;;  %s995_s22 = smov [#allocation2]  }
   0x5   :  { %36 = dma.hbm_to_vmem [thread:$0]  %s29_s14, 1792, %s31_s16, [#allocation6], %s993_s20, %s993_s20, %s994_s21  }
   0x6   :  { %s17_s23 = sshll.u32 %s995_s22, 4  ;;  %s996_s24 = smov 128   ;;  %s18_s23 = int_to_ptr.vmem [resolvable:$true] %s17_s23 }
   0x7   :  { %s997_s1 = smov 8   ;;  %s42_s27 = sshll.u32 %s1197_s2, 4  ;;  %s43_s27 = int_to_ptr.hbm [resolvable:$true] %s42_s27 }
   0x8   :  { %23 = dma.hbm_to_vmem [thread:$0]  %s16_s19, 256, %s18_s23, [#allocation3], %s996_s24, %s996_s24, %s997_s1  }
   0x9   :  { %s998_s0 = smov [#allocation7]  }
   0xa   :  { %s44_s28 = sshll.u32 %s998_s0, 4  ;;  %s45_s28 = int_to_ptr.vmem [resolvable:$true] %s44_s28 }
   0xb   :  { %47 = dma.hbm_to_vmem [thread:$0]  %s43_s27, 128, %s45_s28, [#allocation6]  }
   0xc   :  { %986 = dma.done.wait [#allocation3], 256  }
   0xd   :  { %987 = vsyncadd [#allocation3], 4294967040 }
   0xe   :  { %988 = dma.done.wait [#allocation6], 1920  }
   0xf   :  { %989 = vsyncadd [#allocation6], 4294965376  ;;  %vm71_vm0 = vcmask 261120   ;;  %v1041_v0 = vld [vmem:[#allocation2] sm:$0xff]  ;;  %v1045_v2 = vld [vmem:[#allocation2 + $0x8] sm:$0xff]  ;;  %v999_v4 = vmov 32.0  }
  0x10   :  { %v72_v1 = vsel %vm71_vm0, %v1041_v0, 0.0  ;;  %v75_v3 = vsel %vm71_vm0, %v1045_v2, 0.0  ;;  %844 = vrcp.f32 %v999_v4  ;;  %v789_v21 = vld [vmem:[#allocation5 + $0x8] sm:$0xff]  ;;  %v788_v23 = vld [vmem:[#allocation5] sm:$0xff]  ;;  %v836_v42 = vld [vmem:[#allocation7 + $0x2] ss:$0 sm:$0xff] }
  0x11   :  { %73 = vadd.xlane.f32.xlu0 %v72_v1  ;;  %156 = vmatpush.bf16.msra.mxu0 %v789_v21  ;;  %v837_v47 = vld [vmem:[#allocation7 + $0x3] ss:$0 sm:$0xff]  ;;  %v838_v53 = vld [vmem:[#allocation7] ss:$0 sm:$0xff]  ;;  %s1000_s2 = smov 120   ;;  %s1001_s29 = smov 104  }
  0x12   :  { %s1002_s30 = smov 112   ;;  %s1003_s4 = smov 96   ;;  %vm229_vm8 = vcmask 64512   ;;  %vm299_vm15 = vcmask 523264  }
  0x13   :  { %s1004_s5 = smov 16   ;;  %s1005_s6 = smov 24  }
  0x14   :  { %s1006_s7 = smov [#allocation8]   ;;  %s707_s11 = sshll.u32 %s1198_s3, 4  ;;  %s708_s11 = int_to_ptr.hbm [resolvable:$true] %s707_s11 }
  0x15   :  { %157 = vmatpush.bf16.msra.mxu0 %v788_v23  ;;  %s705_s8 = sshll.u32 %s1006_s7, 4  ;;  %s706_s8 = int_to_ptr.vmem [resolvable:$true] %s705_s8 }
  0x16   :  { %v845_v5 = vpop.eup %844 }
  0x17   :  { %v79_v6 = vmul.f32 32.0, %v845_v5  ;;  %vm83_vm1 = vweird.f32 %v845_v5 }
  0x19   :  { %76 = vadd.xlane.f32.xlu0 %v75_v3  ;;  %v80_v7 = vsub.f32 1.0, %v79_v6 }
  0x1b   :  { %v81_v8 = vmul.f32 %v845_v5, %v80_v7 }
  0x1d   :  { %v82_v9 = vadd.f32 %v845_v5, %v81_v8 }
  0x1f   :  { %v1049_v10 = vsel %vm83_vm1, %v845_v5, %v82_v9 }
  0x84   :  { %v74_v11 = vpop.xlane.xlu0 %73 }
  0x85   :  { %v85_v12 = vmul.f32 %v1049_v10, %v74_v11 }
  0x87   :  { %v87_v13 = vsub.f32 %v1041_v0, %v85_v12 }
  0x89   :  { %v89_v14 = vmul.f32 %v87_v13, %v87_v13 }
  0x8b   :  { %v91_v15 = vsel %vm71_vm0, %v89_v14, 0.0 }
  0x8c   :  { %92 = vadd.xlane.f32.xlu1 %v91_v15  ;;  %v77_v16 = vpop.xlane.xlu0 %76 }
  0x8d   :  { %v86_v17 = vmul.f32 %v1049_v10, %v77_v16 }
  0x8f   :  { %v88_v18 = vsub.f32 %v1045_v2, %v86_v17 }
  0x91   :  { %v90_v19 = vmul.f32 %v88_v18, %v88_v18 }
  0x93   :  { %v94_v20 = vsel %vm71_vm0, %v90_v19, 0.0 }
  0x94   :  { %95 = vadd.xlane.f32.xlu1 %v94_v20 }
  0xff   :  { %v93_v22 = vpop.xlane.xlu1 %92 }
 0x100   :  { %v97_v24 = vmul.f32 %v93_v22, %v1049_v10 }
 0x102   :  { %v99_v25 = vadd.f32 1e-05, %v97_v24 }
 0x104   :  { %846 = vrsqrt.f32 %v99_v25  ;;  %vm107_vm3 = vweird.f32 %v99_v25 }
 0x107   :  { %v96_v26 = vpop.xlane.xlu1 %95 }
 0x108   :  { %v98_v27 = vmul.f32 %v96_v26, %v1049_v10 }
 0x10a   :  { %v847_v28 = vpop.eup %846  ;;  %v100_v29 = vadd.f32 1e-05, %v98_v27 }
 0x10b   :  { %v102_v30 = vmul.f32 %v847_v28, %v99_v25  ;;  %vm108_vm2 = vweird.f32 %v847_v28 }
 0x10c   :  { %848 = vrsqrt.f32 %v100_v29  ;;  %vm109_vm4 = vmor %vm107_vm3, %vm108_vm2  ;;  %vm117_vm6 = vweird.f32 %v100_v29 }
 0x10d   :  { %v103_v31 = vmul.f32 %v847_v28, %v102_v30 }
 0x10f   :  { %v104_v32 = vmul.f32 0.5, %v103_v31 }
 0x111   :  { %v105_v33 = vsub.f32 1.5, %v104_v32 }
 0x112   :  { %v849_v34 = vpop.eup %848 }
 0x113   :  { %v106_v35 = vmul.f32 %v847_v28, %v105_v33  ;;  %v112_v36 = vmul.f32 %v849_v34, %v100_v29  ;;  %vm118_vm5 = vweird.f32 %v849_v34 }
 0x114   :  { %vm119_vm7 = vmor %vm117_vm6, %vm118_vm5 }
 0x115   :  { %v113_v37 = vmul.f32 %v849_v34, %v112_v36  ;;  %v110_v38 = vsel %vm109_vm4, %v847_v28, %v106_v35 }
 0x116   :  { %v121_v41 = vmul.f32 %v110_v38, %v87_v13  ;;  %v177_v13 = vlaneseq }
 0x117   :  { %v114_v39 = vmul.f32 0.5, %v113_v37 }
 0x118   :  { %v124_v46 = vmul.f32 %v836_v42, %v121_v41  ;;  %v1084_v14 = vshrl.u32 %v177_v13, 7  ;;  %v1087_v16 = vand.u32 127, %v177_v13 }
 0x119   :  { %v115_v40 = vsub.f32 1.5, %v114_v39 }
 0x11a   :  { %v127_v49 = vadd.f32 %v837_v47, %v124_v46  ;;  %v180_v15 = vadd.s32 16, %v1084_v14  ;;  %v188_v19 = vshra.s32 %v1084_v14, 3  ;;  %v181_v20 = vadd.s32 24, %v1084_v14 }
 0x11b   :  { %v116_v43 = vmul.f32 %v849_v34, %v115_v40  ;;  %vm205_vm12 = vcmp.ge.s32.totalorder %v1084_v14, %v1087_v16  ;;  %v179_v21 = vadd.s32 8, %v1084_v14  ;;  %v182_v32 = vadd.s32 32, %v1084_v14 }
 0x11c   :  { %v190_v17 = vshra.s32 %v180_v15, 3  ;;  %vm207_vm10 = vcmp.ge.s32.totalorder %v180_v15, %v1087_v16  ;;  %v191_v24 = vshra.s32 %v181_v20, 3  ;;  %vm208_vm2 = vcmp.ge.s32.totalorder %v181_v20, %v1087_v16 }
 0x11d   :  { %v120_v44 = vsel %vm119_vm7, %v849_v34, %v116_v43  ;;  %v189_v27 = vshra.s32 %v179_v21, 3  ;;  %vm206_vm4 = vcmp.ge.s32.totalorder %v179_v21, %v1087_v16  ;;  %v192_v37 = vshra.s32 %v182_v32, 3 }
 0x11e   :  { %v122_v45 = vmul.f32 %v120_v44, %v88_v18  ;;  %v1090_v18 = vshra.s32 %v1087_v16, 3 }
 0x120   :  { %v125_v48 = vmul.f32 %v836_v42, %v122_v45  ;;  %vm199_vm9 = vcmp.eq.s32.totalorder %v190_v17, %v1090_v18  ;;  %vm197_vm11 = vcmp.eq.s32.totalorder %v188_v19, %v1090_v18  ;;  %vm200_vm1 = vcmp.eq.s32.totalorder %v191_v24, %v1090_v18 }
 0x121   :  { %vm215_vm13 = vmand %vm199_vm9, %vm207_vm10  ;;  %vm198_vm3 = vcmp.eq.s32.totalorder %v189_v27, %v1090_v18  ;;  %vm201_vm7 = vcmp.eq.s32.totalorder %v192_v37, %v1090_v18  ;;  %vm209_vm9 = vcmp.ge.s32.totalorder %v182_v32, %v1087_v16  ;;  %v183_v42 = vadd.s32 40, %v1084_v14 }
 0x122   :  { %v128_v50 = vadd.f32 %v837_v47, %v125_v48  ;;  %vm213_vm14 = vmand %vm197_vm11, %vm205_vm12  ;;  %v184_v48 = vadd.s32 48, %v1084_v14 }
 0x123   :  { %vm216_vm5 = vmand %vm200_vm1, %vm208_vm2  ;;  %v193_v45 = vshra.s32 %v183_v42, 3  ;;  %vm210_vm12 = vcmp.ge.s32.totalorder %v183_v42, %v1087_v16 }
 0x124   :  { %v133_v51 = vpack.c.bf16 %v128_v50, %v127_v49  ;;  %vm214_vm6 = vmand %vm198_vm3, %vm206_vm4  ;;  %vm211_vm1 = vcmp.ge.s32.totalorder %v184_v48, %v1087_v16 }
 0x125   :  { %vm217_vm10 = vmand %vm201_vm7, %vm209_vm9  ;;  %vm202_vm11 = vcmp.eq.s32.totalorder %v193_v45, %v1090_v18 }
 0x126   :  { %729 = vmatmul.msk.bf16.vlgmr.msra.gmra.mxu0 %vm71_vm0, %v133_v51  ;;  %v194_v51 = vshra.s32 %v184_v48, 3 }
 0x1a3   :  { %v159_v52 = vpop.f32.mrf.mxu0 }
 0x1a4   :  { %v160_v54 = vadd.f32 %v838_v53, %v159_v52 }
 0x1a6   :  { %v164_v56 = vpack.c.bf16 %v160_v54, %v160_v54  ;;  %v185_v54 = vadd.s32 56, %v1084_v14 }
 0x1a8   :  { %v168_v59 = vunpack.c.l.b16 %v164_v56  ;;  %vm212_vm4 = vcmp.ge.s32.totalorder %v185_v54, %v1087_v16 }
 0x1ab   :  { %v161_v55 = vpop.f32.mrf.mxu0 }
 0x1ac   :  { %v162_v57 = vadd.f32 %v838_v53, %v161_v55 }
 0x1ae   :  { %v165_v58 = vpack.c.bf16 %v162_v57, %v162_v57  ;;  %v195_v57 = vshra.s32 %v185_v54, 3 }
 0x1b0   :  { %v169_v60 = vunpack.c.l.b16 %v165_v58  ;;  %vm204_vm3 = vcmp.eq.s32.totalorder %v195_v57, %v1090_v18 }
 0x1b2   :  { %v1060_v61 = vpack.c.b16 %v169_v60, %v168_v59 }
 0x1b4   :  { %171 = vrot.lane.b32.xlu0 %v1060_v61, %s1000_s2  ;;  %175 = vrot.lane.b32.xlu2 %v1060_v61, %s1001_s29 }
 0x1bc   :  { %173 = vrot.lane.b32.xlu2 %v1060_v61, %s1002_s30 }
 0x20e   :  { %v176_v62 = vpop.permute.xlu2 %175 }
 0x20f   :  { %227 = vrot.lane.b32.xlu1 %v176_v62, %s1003_s4 }
 0x216   :  { %v1065_v63 = vpop.permute.xlu2 %173 }
 0x217   :  { %398 = vrot.lane.b32.xlu1 %v176_v62, %s993_s20  ;;  %225 = vrot.lane.b32.xlu2 %v1065_v63, %s1003_s4 }
 0x226   :  { %v1069_v1 = vpop.permute.xlu0 %171 }
 0x227   :  { %223 = vrot.lane.b32.xlu2 %v1069_v1, %s1003_s4 }
 0x22f   :  { %221 = vrot.lane.b32.xlu2 %v1060_v61, %s1003_s4 }
 0x271   :  { %v226_v5 = vpop.permute.xlu2 %225 }
 0x272   :  { %v249_v7 = vsel %vm229_vm8, %v226_v5, 0 }
 0x281   :  { %v228_v3 = vpop.permute.xlu1 %227  ;;  %v224_v8 = vpop.permute.xlu2 %223 }
 0x282   :  { %v252_v4 = vsel %vm229_vm8, %v228_v3, 0  ;;  %v246_v9 = vsel %vm229_vm8, %v224_v8, 0 }
 0x283   :  { %258 = vmatpush.bf16.xpose.msrb.mxu0 %v252_v4  ;;  %802 = vmatpush.bf16.xpose.msra.mxu1 %v252_v4 }
 0x289   :  { %v399_v6 = vpop.permute.xlu1 %398  ;;  %v222_v11 = vpop.permute.xlu2 %221 }
 0x28a   :  { %420 = vmatpush.bf16.msra.mxu2 %v399_v6  ;;  %v243_v12 = vsel %vm229_vm8, %v222_v11, 0 }
 0x28b   :  { %259 = vmatpush.bf16.xpose.msrb.mxu0 %v249_v7  ;;  %803 = vmatpush.bf16.xpose.msra.mxu1 %v249_v7 }
 0x293   :  { %260 = vmatpush.bf16.xpose.msrb.mxu0 %v246_v9  ;;  %804 = vmatpush.bf16.xpose.msra.mxu1 %v246_v9 }
 0x29b   :  { %261 = vmatpush.bf16.xpose.msrb.mxu0 %v243_v12  ;;  %805 = vmatpush.bf16.xpose.msra.mxu1 %v243_v12 }
 0x2a2   :  { %730 = vmatmul.msk.bf16.vlgmr.msrb.gmra.mxu0 %vm229_vm8, %v1060_v61  ;;  %731 = vmatmul.msk.bf16.vlgmr.msra.gmra.mxu1 %vm229_vm8, %v1069_v1 }
 0x2b2   :  { %732 = vmatmul.msk.bf16.gmra.mxu1 %vm229_vm8, %v1065_v63 }
 0x2c2   :  { %733 = vmatmul.msk.bf16.gmra.mxu1 %vm229_vm8, %v176_v62 }
 0x31f   :  { %v263_v22 = vpop.f32.mrf.mxu0  ;;  %v268_v23 = vpop.f32.mrf.mxu1 }
 0x320   :  { %v283_v25 = vmul.f32 0.35355338, %v263_v22  ;;  %v285_v26 = vmul.f32 0.35355338, %v268_v23 }
 0x322   :  { %v1100_v28 = vsel %vm215_vm13, %v285_v26, -1e+30  ;;  %v1102_v29 = vsel %vm213_vm14, %v283_v25, -1e+30  ;;  %vm218_vm13 = vmand %vm202_vm11, %vm210_vm12  ;;  %vm203_vm14 = vcmp.eq.s32.totalorder %v194_v51, %v1090_v18 }
 0x323   :  { %v306_v30 = vsel %vm299_vm15, %v1100_v28, -inf  ;;  %v300_v31 = vsel %vm299_vm15, %v1102_v29, -inf  ;;  %vm219_vm2 = vmand %vm203_vm14, %vm211_vm1 }
 0x324   :  { %307 = vmax.xlane.f32.xlu1 %v306_v30  ;;  %301 = vmax.xlane.f32.xlu0 %v300_v31 }
 0x327   :  { %v265_v33 = vpop.f32.mrf.mxu0  ;;  %v270_v34 = vpop.f32.mrf.mxu1 }
 0x328   :  { %v284_v35 = vmul.f32 0.35355338, %v265_v33  ;;  %v286_v36 = vmul.f32 0.35355338, %v270_v34 }
 0x32a   :  { %v294_v38 = vsel %vm216_vm5, %v286_v36, -1e+30  ;;  %v292_v39 = vsel %vm214_vm6, %v284_v35, -1e+30  ;;  %vm220_vm5 = vmand %vm204_vm3, %vm212_vm4  ;;  %vm474_vm6 = vcmask 195584  }
 0x32b   :  { %v309_v40 = vsel %vm299_vm15, %v294_v38, -inf  ;;  %v303_v41 = vsel %vm299_vm15, %v292_v39, -inf }
 0x32c   :  { %310 = vmax.xlane.f32.xlu0 %v309_v40  ;;  %304 = vmax.xlane.f32.xlu2 %v303_v41 }
 0x32f   :  { %v273_v43 = vpop.f32.mrf.mxu1 }
 0x330   :  { %v287_v44 = vmul.f32 0.35355338, %v273_v43 }
 0x332   :  { %v1118_v46 = vsel %vm217_vm10, %v287_v44, -1e+30 }
 0x333   :  { %v312_v47 = vsel %vm299_vm15, %v1118_v46, -inf }
 0x334   :  { %313 = vmax.xlane.f32.xlu2 %v312_v47 }
 0x337   :  { %v275_v49 = vpop.f32.mrf.mxu1 }
 0x338   :  { %v288_v50 = vmul.f32 0.35355338, %v275_v49 }
 0x33a   :  { %v296_v52 = vsel %vm218_vm13, %v288_v50, -1e+30 }
 0x33b   :  { %v315_v53 = vsel %vm299_vm15, %v296_v52, -inf }
 0x33c   :  { %316 = vmax.xlane.f32.xlu1 %v315_v53 }
 0x33f   :  { %v278_v55 = vpop.f32.mrf.mxu1 }
 0x340   :  { %v289_v56 = vmul.f32 0.35355338, %v278_v55 }
 0x342   :  { %v297_v58 = vsel %vm219_vm2, %v289_v56, -1e+30 }
 0x343   :  { %v318_v59 = vsel %vm299_vm15, %v297_v58, -inf }
 0x344   :  { %319 = vmax.xlane.f32.xlu0 %v318_v59 }
 0x347   :  { %v280_v60 = vpop.f32.mrf.mxu1 }
 0x348   :  { %v290_v62 = vmul.f32 0.35355338, %v280_v60 }
 0x34a   :  { %v298_v3 = vsel %vm220_vm5, %v290_v62, -1e+30 }
 0x34b   :  { %v321_v4 = vsel %vm299_vm15, %v298_v3, -inf }
 0x34c   :  { %322 = vmax.xlane.f32.xlu2 %v321_v4 }
 0x355   :  { %392 = vrot.lane.b32.xlu1 %v1060_v61, %s993_s20 }
 0x397   :  { %v302_v5 = vpop.xlane.xlu0 %301  ;;  %v308_v25 = vpop.xlane.xlu1 %307 }
 0x398   :  { %v324_v6 = vsub.f32 %v1102_v29, %v302_v5  ;;  %v326_v26 = vsub.f32 %v1100_v28, %v308_v25 }
 0x39a   :  { %v332_v7 = vmul.f32 1.442695, %v324_v6  ;;  %v336_v27 = vmul.f32 1.442695, %v326_v26 }
 0x39c   :  { %850 = vpow2.f32 %v332_v7 }
 0x39f   :  { %v311_v8 = vpop.xlane.xlu0 %310  ;;  %v305_v9 = vpop.xlane.xlu2 %304 }
 0x3a0   :  { %v327_v11 = vsub.f32 %v294_v38, %v311_v8  ;;  %v325_v12 = vsub.f32 %v292_v39, %v305_v9 }
 0x3a2   :  { %v338_v13 = vmul.f32 1.442695, %v327_v11  ;;  %v334_v14 = vmul.f32 1.442695, %v325_v12  ;;  %v851_v15 = vpop.eup %850 }
 0x3a3   :  { %v348_v16 = vsel %vm299_vm15, %v851_v15, 0.0 }
 0x3a4   :  { %852 = vpow2.f32 %v338_v13  ;;  %349 = vadd.xlane.f32.xlu0 %v348_v16 }
 0x3a5   :  { %854 = vpow2.f32 %v334_v14 }
 0x3a7   :  { %v314_v30 = vpop.xlane.xlu2 %313 }
 0x3aa   :  { %v1137_v17 = vpop.eup %852 }
 0x3ab   :  { %v855_v61 = vpop.eup %854  ;;  %v357_v18 = vsel %vm299_vm15, %v1137_v17, 0.0 }
 0x3ac   :  { %358 = vadd.xlane.f32.xlu1 %v357_v18  ;;  %v351_v19 = vsel %vm299_vm15, %v855_v61, 0.0 }
 0x3ad   :  { %352 = vadd.xlane.f32.xlu2 %v351_v19 }
 0x3af   :  { %v317_v29 = vpop.xlane.xlu1 %316 }
 0x3b0   :  { %v329_v31 = vsub.f32 %v296_v52, %v317_v29 }
 0x3b2   :  { %v342_v32 = vmul.f32 1.442695, %v329_v31 }
 0x3b7   :  { %v320_v20 = vpop.xlane.xlu0 %319 }
 0x3b8   :  { %v330_v21 = vsub.f32 %v297_v58, %v320_v20  ;;  %396 = vrot.lane.b32.xlu0 %v1065_v63, %s993_s20  ;;  %v328_v63 = vsub.f32 %v1118_v46, %v314_v30 }
 0x3ba   :  { %v344_v22 = vmul.f32 1.442695, %v330_v21  ;;  %v340_v34 = vmul.f32 1.442695, %v328_v63 }
 0x3bc   :  { %856 = vpow2.f32 %v344_v22 }
 0x3bd   :  { %858 = vpow2.f32 %v336_v27  ;;  %v790_v27 = vld [vmem:[#allocation5 + $0x10] sm:$0xff] }
 0x3be   :  { %860 = vpow2.f32 %v342_v32 }
 0x3bf   :  { %v323_v35 = vpop.xlane.xlu2 %322  ;;  %862 = vpow2.f32 %v340_v34 }
 0x3c2   :  { %v1144_v23 = vpop.eup %856 }
 0x3c3   :  { %v366_v24 = vsel %vm299_vm15, %v1144_v23, 0.0  ;;  %v859_v33 = vpop.eup %858 }
 0x3c4   :  { %367 = vadd.xlane.f32.xlu1 %v366_v24  ;;  %v354_v36 = vsel %vm299_vm15, %v859_v33, 0.0  ;;  %v861_v37 = vpop.eup %860 }
 0x3c5   :  { %394 = vrot.lane.b32.xlu2 %v1069_v1, %s993_s20  ;;  %v331_v1 = vsub.f32 %v298_v3, %v323_v35  ;;  %v863_v28 = vpop.eup %862  ;;  %v363_v39 = vsel %vm299_vm15, %v861_v37, 0.0 }
 0x3c6   :  { %v360_v40 = vsel %vm299_vm15, %v863_v28, 0.0 }
 0x3c7   :  { %v346_v38 = vmul.f32 1.442695, %v331_v1  ;;  %v393_v50 = vpop.permute.xlu1 %392 }
 0x3c9   :  { %864 = vpow2.f32 %v346_v38 }
 0x3cf   :  { %v865_v41 = vpop.eup %864 }
 0x3d0   :  { %v369_v42 = vsel %vm299_vm15, %v865_v41, 0.0 }
 0x3e2   :  { %355 = vadd.xlane.f32.xlu0 %v354_v36 }
 0x3ea   :  { %364 = vadd.xlane.f32.xlu0 %v363_v39 }
 0x3ee   :  { %361 = vadd.xlane.f32.xlu2 %v360_v40 }
 0x3f6   :  { %370 = vadd.xlane.f32.xlu2 %v369_v42  ;;  %v839_v42 = vld [vmem:[#allocation7 + $0x6] ss:$0 sm:$0xff] }
 0x417   :  { %v350_v43 = vpop.xlane.xlu0 %349 }
 0x41f   :  { %v359_v53 = vpop.xlane.xlu1 %358 }
 0x420   :  { %v353_v44 = vpop.xlane.xlu2 %352 }
 0x421   :  { %866 = vrcp.f32 %v353_v44 }
 0x422   :  { %868 = vrcp.f32 %v350_v43 }
 0x423   :  { %870 = vrcp.f32 %v359_v53 }
 0x427   :  { %v867_v46 = vpop.eup %866 }
 0x428   :  { %v395_v47 = vpop.permute.xlu2 %394  ;;  %v869_v48 = vpop.eup %868  ;;  %v381_v49 = vmul.f32 %v867_v46, %v855_v61 }
 0x429   :  { %v380_v51 = vmul.f32 %v869_v48, %v851_v15  ;;  %v871_v55 = vpop.eup %870 }
 0x42a   :  { %v397_v45 = vpop.permute.xlu0 %396  ;;  %v383_v58 = vmul.f32 %v871_v55, %v1137_v17 }
 0x42b   :  { %421 = vmatpush.bf16.msra.mxu2 %v397_v45  ;;  %v388_v52 = vpack.c.bf16 %v381_v49, %v380_v51 }
 0x42f   :  { %422 = vmatpush.bf16.msra.mxu2 %v395_v47 }
 0x433   :  { %423 = vmatpush.bf16.msra.mxu2 %v393_v50 }
 0x436   :  { %734 = vmatmul.msk.bf16.vlgmr.msra.gmra.mxu2 %vm299_vm15, %v388_v52 }
 0x437   :  { %v368_v9 = vpop.xlane.xlu1 %367 }
 0x455   :  { %v356_v54 = vpop.xlane.xlu0 %355 }
 0x456   :  { %872 = vrcp.f32 %v356_v54 }
 0x45c   :  { %v873_v56 = vpop.eup %872 }
 0x45d   :  { %v382_v57 = vmul.f32 %v873_v56, %v859_v33  ;;  %v365_v62 = vpop.xlane.xlu0 %364 }
 0x45f   :  { %v389_v59 = vpack.c.bf16 %v383_v58, %v382_v57 }
 0x461   :  { %v362_v60 = vpop.xlane.xlu2 %361  ;;  %735 = vmatmul.msk.bf16.gmra.mxu2 %vm299_vm15, %v389_v59  ;;  %v793_v59 = vld [vmem:[#allocation5 + $0x28] sm:$0xff] }
 0x462   :  { %874 = vrcp.f32 %v362_v60  ;;  %607 = vmatpush.bf16.msra.mxu0 %v793_v59 }
 0x463   :  { %876 = vrcp.f32 %v365_v62 }
 0x468   :  { %v875_v3 = vpop.eup %874 }
 0x469   :  { %v877_v4 = vpop.eup %876  ;;  %v384_v5 = vmul.f32 %v875_v3, %v863_v28  ;;  %v371_v7 = vpop.xlane.xlu2 %370  ;;  %v792_v3 = vld [vmem:[#allocation5 + $0x20] sm:$0xff] }
 0x46a   :  { %v385_v6 = vmul.f32 %v877_v4, %v861_v37  ;;  %878 = vrcp.f32 %v371_v7  ;;  %608 = vmatpush.bf16.msra.mxu0 %v792_v3 }
 0x46b   :  { %880 = vrcp.f32 %v368_v9 }
 0x46c   :  { %v390_v8 = vpack.c.bf16 %v385_v6, %v384_v5 }
 0x470   :  { %v879_v11 = vpop.eup %878 }
 0x471   :  { %736 = vmatmul.msk.bf16.gmra.mxu2 %vm299_vm15, %v390_v8  ;;  %v881_v12 = vpop.eup %880  ;;  %v387_v13 = vmul.f32 %v879_v11, %v865_v41 }
 0x472   :  { %v386_v14 = vmul.f32 %v881_v12, %v1144_v23  ;;  %v791_v23 = vld [vmem:[#allocation5 + $0x18] sm:$0xff] }
 0x473   :  { %504 = vmatpush.bf16.msra.mxu3 %v791_v23 }
 0x474   :  { %v391_v15 = vpack.c.bf16 %v387_v13, %v386_v14 }
 0x477   :  { %505 = vmatpush.bf16.msra.mxu3 %v790_v27 }
 0x481   :  { %737 = vmatmul.msk.bf16.gmra.mxu2 %vm299_vm15, %v391_v15  ;;  %vm471_vm15 = vcmask 130048  }
 0x4b9   :  { %v425_v16 = vpop.f32.mrf.mxu2 }
 0x4c1   :  { %v427_v17 = vpop.f32.mrf.mxu2 }
 0x4e4   :  { %v430_v61 = vpop.f32.mrf.mxu2 }
 0x4ec   :  { %v432_v18 = vpop.f32.mrf.mxu2 }
 0x4ed   :  { %v821_v19 = vpack.i.bf16 %v432_v18, %v430_v61 }
 0x4ef   :  { %822 = vrot.lane.b32.xlu0 %v821_v19, %s997_s1 }
 0x4f4   :  { %v435_v20 = vpop.f32.mrf.mxu2 }
 0x4fc   :  { %v437_v21 = vpop.f32.mrf.mxu2 }
 0x4fd   :  { %v826_v22 = vpack.i.bf16 %v437_v21, %v435_v20  ;;  %v840_v20 = vld [vmem:[#allocation7 + $0x4] ss:$0 sm:$0xff] }
 0x4ff   :  { %827 = vrot.lane.b32.xlu1 %v826_v22, %s1004_s5 }
 0x504   :  { %v440_v24 = vpop.f32.mrf.mxu2 }
 0x50c   :  { %v442_v25 = vpop.f32.mrf.mxu2 }
 0x50d   :  { %v831_v26 = vpack.i.bf16 %v442_v25, %v440_v24  ;;  %v841_v24 = vld [vmem:[#allocation7 + $0x5] ss:$0 sm:$0xff] }
 0x50f   :  { %832 = vrot.lane.b32.xlu2 %v831_v26, %s1005_s6 }
 0x561   :  { %v823_v29 = vpop.permute.xlu0 %822 }
 0x562   :  { %v825_v30 = vunpack.i.h.bf16 %v823_v29  ;;  %v824_v31 = vunpack.i.l.bf16 %v823_v29 }
 0x564   :  { %v470_v35 = vsel %vm229_vm8, %v427_v17, %v825_v30  ;;  %v469_v36 = vsel %vm229_vm8, %v425_v16, %v824_v31  ;;  %v801_v31 = vld [vmem:[#allocation5 + $0x68] sm:$0xff] }
 0x565   :  { %683 = vmatpush.bf16.msrb.mxu3 %v801_v31 }
 0x569   :  { %v833_v63 = vpop.permute.xlu2 %832 }
 0x56a   :  { %v835_v1 = vunpack.i.h.bf16 %v833_v63  ;;  %v834_v37 = vunpack.i.l.bf16 %v833_v63  ;;  %v800_v63 = vld [vmem:[#allocation5 + $0x60] sm:$0xff] }
 0x56b   :  { %684 = vmatpush.bf16.msrb.mxu3 %v800_v63 }
 0x571   :  { %v828_v32 = vpop.permute.xlu1 %827 }
 0x572   :  { %v830_v33 = vunpack.i.h.bf16 %v828_v32  ;;  %v829_v34 = vunpack.i.l.bf16 %v828_v32  ;;  %v799_v32 = vld [vmem:[#allocation5 + $0x58] sm:$0xff] }
 0x573   :  { %685 = vmatpush.bf16.msrb.mxu3 %v799_v32 }
 0x574   :  { %v473_v38 = vsel %vm471_vm15, %v470_v35, %v830_v33  ;;  %v472_v28 = vsel %vm471_vm15, %v469_v36, %v829_v34  ;;  %v798_v33 = vld [vmem:[#allocation5 + $0x50] sm:$0xff]  ;;  %v797_v34 = vld [vmem:[#allocation5 + $0x48] sm:$0xff]  ;;  %v796_v35 = vld [vmem:[#allocation5 + $0x40] sm:$0xff] }
 0x575   :  { %v475_v39 = vsel %vm474_vm6, %v472_v28, %v834_v37  ;;  %v476_v40 = vsel %vm474_vm6, %v473_v38, %v835_v1  ;;  %v795_v36 = vld [vmem:[#allocation5 + $0x38] sm:$0xff]  ;;  %v842_v1 = vld [vmem:[#allocation7 + $0x1] ss:$0 sm:$0xff] }
 0x576   :  { %v481_v41 = vpack.c.bf16 %v476_v40, %v475_v39  ;;  %v794_v37 = vld [vmem:[#allocation5 + $0x30] sm:$0xff] }
 0x577   :  { %686 = vmatpush.bf16.msrb.mxu3 %v798_v33 }
 0x578   :  { %746 = vmatmul.msk.bf16.vlgmr.msra.gmra.mxu3 %vm71_vm0, %v481_v41 }
 0x57b   :  { %687 = vmatpush.bf16.msrb.mxu3 %v797_v34 }
 0x57f   :  { %688 = vmatpush.bf16.msrb.mxu3 %v796_v35 }
 0x583   :  { %689 = vmatpush.bf16.msrb.mxu3 %v795_v36 }
 0x587   :  { %690 = vmatpush.bf16.msrb.mxu3 %v794_v37 }
 0x5fb   :  { %v507_v43 = vpop.f32.mrf.mxu3 }
 0x5fc   :  { %v508_v44 = vadd.f32 %v839_v42, %v507_v43 }
 0x5fe   :  { %v1167_v45 = vadd.f32 %v508_v44, %v1041_v0 }
 0x600   :  { %v514_v46 = vsel %vm71_vm0, %v1167_v45, 0.0 }
 0x601   :  { %515 = vadd.xlane.f32.xlu0 %v514_v46 }
 0x603   :  { %v509_v47 = vpop.f32.mrf.mxu3 }
 0x604   :  { %v510_v48 = vadd.f32 %v839_v42, %v509_v47 }
 0x606   :  { %v1172_v49 = vadd.f32 %v510_v48, %v1045_v2 }
 0x608   :  { %v517_v50 = vsel %vm71_vm0, %v1172_v49, 0.0 }
 0x609   :  { %518 = vadd.xlane.f32.xlu1 %v517_v50 }
 0x674   :  { %v516_v51 = vpop.xlane.xlu0 %515 }
 0x675   :  { %v520_v52 = vmul.f32 %v516_v51, %v1049_v10 }
 0x677   :  { %v522_v53 = vsub.f32 %v1167_v45, %v520_v52 }
 0x679   :  { %v524_v0 = vmul.f32 %v522_v53, %v522_v53 }
 0x67b   :  { %v526_v54 = vsel %vm71_vm0, %v524_v0, 0.0 }
 0x67c   :  { %v519_v55 = vpop.xlane.xlu1 %518  ;;  %527 = vadd.xlane.f32.xlu2 %v526_v54 }
 0x67d   :  { %v521_v56 = vmul.f32 %v519_v55, %v1049_v10 }
 0x67f   :  { %v523_v57 = vsub.f32 %v1172_v49, %v521_v56 }
 0x681   :  { %v525_v2 = vmul.f32 %v523_v57, %v523_v57 }
 0x683   :  { %v529_v58 = vsel %vm71_vm0, %v525_v2, 0.0 }
 0x684   :  { %530 = vadd.xlane.f32.xlu0 %v529_v58 }
 0x6ef   :  { %v528_v60 = vpop.xlane.xlu2 %527 }
 0x6f0   :  { %v532_v62 = vmul.f32 %v528_v60, %v1049_v10  ;;  %v843_v60 = vld [vmem:[#allocation7 + $0x7] ss:$0 sm:$0xff] }
 0x6f2   :  { %v534_v4 = vadd.f32 1e-05, %v532_v62 }
 0x6f4   :  { %882 = vrsqrt.f32 %v534_v4  ;;  %vm542_vm7 = vweird.f32 %v534_v4 }
 0x6f7   :  { %v531_v5 = vpop.xlane.xlu0 %530 }
 0x6f8   :  { %v533_v6 = vmul.f32 %v531_v5, %v1049_v10 }
 0x6fa   :  { %v883_v7 = vpop.eup %882  ;;  %v535_v8 = vadd.f32 1e-05, %v533_v6 }
 0x6fb   :  { %v537_v9 = vmul.f32 %v883_v7, %v534_v4  ;;  %vm543_vm8 = vweird.f32 %v883_v7 }
 0x6fc   :  { %884 = vrsqrt.f32 %v535_v8  ;;  %vm544_vm9 = vmor %vm542_vm7, %vm543_vm8  ;;  %vm552_vm11 = vweird.f32 %v535_v8 }
 0x6fd   :  { %v538_v11 = vmul.f32 %v883_v7, %v537_v9 }
 0x6ff   :  { %v539_v12 = vmul.f32 0.5, %v538_v11 }
 0x701   :  { %v540_v13 = vsub.f32 1.5, %v539_v12 }
 0x702   :  { %v885_v14 = vpop.eup %884 }
 0x703   :  { %v541_v15 = vmul.f32 %v883_v7, %v540_v13  ;;  %v547_v16 = vmul.f32 %v885_v14, %v535_v8  ;;  %vm553_vm10 = vweird.f32 %v885_v14 }
 0x704   :  { %vm554_vm12 = vmor %vm552_vm11, %vm553_vm10 }
 0x705   :  { %v548_v17 = vmul.f32 %v885_v14, %v547_v16  ;;  %v545_v61 = vsel %vm544_vm9, %v883_v7, %v541_v15 }
 0x706   :  { %v556_v10 = vmul.f32 %v545_v61, %v522_v53 }
 0x707   :  { %v549_v18 = vmul.f32 0.5, %v548_v17 }
 0x708   :  { %v559_v25 = vmul.f32 %v840_v20, %v556_v10 }
 0x709   :  { %v550_v19 = vsub.f32 1.5, %v549_v18 }
 0x70a   :  { %v562_v27 = vadd.f32 %v841_v24, %v559_v25 }
 0x70b   :  { %v551_v21 = vmul.f32 %v885_v14, %v550_v19 }
 0x70d   :  { %v555_v22 = vsel %vm554_vm12, %v885_v14, %v551_v21 }
 0x70e   :  { %v557_v26 = vmul.f32 %v555_v22, %v523_v57 }
 0x710   :  { %v560_v23 = vmul.f32 %v840_v20, %v557_v26 }
 0x712   :  { %v563_v29 = vadd.f32 %v841_v24, %v560_v23 }
 0x714   :  { %v584_v30 = vpack.c.bf16 %v563_v29, %v562_v27 }
 0x716   :  { %755 = vmatmul.msk.bf16.vlgmr.msra.gmra.mxu0 %vm71_vm0, %v584_v30 }
 0x793   :  { %v610_v38 = vpop.f32.mrf.mxu0 }
 0x794   :  { %v611_v28 = vadd.f32 %v842_v1, %v610_v38 }
 0x796   :  { %v615_v39 = vmul.f32 %v611_v28, %v611_v28 }
 0x798   :  { %v617_v40 = vmul.f32 %v615_v39, %v611_v28 }
 0x79a   :  { %v619_v41 = vmul.f32 0.044715, %v617_v40 }
 0x79b   :  { %v612_v42 = vpop.f32.mrf.mxu0 }
 0x79c   :  { %v621_v43 = vadd.f32 %v619_v41, %v611_v28  ;;  %v613_v44 = vadd.f32 %v842_v1, %v612_v42 }
 0x79e   :  { %v623_v46 = vmul.f32 0.7978846, %v621_v43  ;;  %v616_v47 = vmul.f32 %v613_v44, %v613_v44 }
 0x7a0   :  { %v618_v48 = vmul.f32 %v616_v47, %v613_v44  ;;  %886 = vtanh.f32 %v623_v46 }
 0x7a2   :  { %v620_v50 = vmul.f32 0.044715, %v618_v48 }
 0x7a4   :  { %v622_v51 = vadd.f32 %v620_v50, %v613_v44 }
 0x7a6   :  { %v624_v52 = vmul.f32 0.7978846, %v622_v51  ;;  %v887_v53 = vpop.eup %886 }
 0x7a7   :  { %v627_v0 = vadd.f32 1.0, %v887_v53 }
 0x7a8   :  { %888 = vtanh.f32 %v624_v52 }
 0x7a9   :  { %v629_v56 = vmul.f32 0.5, %v627_v0 }
 0x7ab   :  { %v631_v2 = vmul.f32 %v629_v56, %v611_v28 }
 0x7ae   :  { %v889_v54 = vpop.eup %888 }
 0x7af   :  { %v628_v55 = vadd.f32 1.0, %v889_v54 }
 0x7b1   :  { %v630_v57 = vmul.f32 0.5, %v628_v55 }
 0x7b3   :  { %v632_v58 = vmul.f32 %v630_v57, %v613_v44 }
 0x7b5   :  { %v633_v59 = vpack.c.bf16 %v632_v58, %v631_v2 }
 0x7b7   :  { %691 = vmatmul.bf16.vlgmr.msrb.gmra.mxu3 %v633_v59 }
 0x83a   :  { %v692_v62 = vpop.f32.mrf.mxu3 }
 0x83b   :  { %v693_v3 = vadd.f32 %v843_v60, %v692_v62 }
 0x83d   :  { %v697_v4 = vadd.f32 %v693_v3, %v1167_v45 }
 0x83f   :  { %699 = vst.msk [vmem:[#allocation8] sm:$0xff] %vm71_vm0, %v697_v4 }
 0x842   :  { %v694_v5 = vpop.f32.mrf.mxu3 }
 0x843   :  { %v695_v6 = vadd.f32 %v843_v60, %v694_v5 }
 0x845   :  { %v698_v7 = vadd.f32 %v695_v6, %v1172_v49 }
 0x847   :  { %700 = vst.msk [vmem:[#allocation8 + $0x8] sm:$0xff] %vm71_vm0, %v698_v7 }
 0x848   :  { %713 = dma.vmem_to_hbm [thread:$0]  %s706_s8, 256, %s708_s11, [#allocation4], %s996_s24, %s996_s24, %s997_s1  }
 0x849   :  { %990 = dma.done.wait [#allocation4], 256  }
 0x84a   :  { %991 = vsyncadd [#allocation4], 4294967040 }
 0x84b   :  { %718 = vsyncpa [#allocation3], 1 }
 0x84c   :  { %719 = vsyncpa [#allocation6], 1 }
 0x84d   :  { %720 = vsyncpa [#allocation4], 1 }

</bundles_post_ra>
